<compile_context>
chip_gen: v7x
topology: tpu7x:2x2x1
jax: 0.10.0
libtpu: 0.0.40
codegen_flags: <defaults>
</compile_context>

<pallas_src>
import jax
import jax.numpy as jnp
from jax.experimental import pallas as pl
from jax.experimental.pallas import tpu as pltpu


# ----------------------------------------------------------------------------------
# Pallas kernel: one batch element per grid step.
#   x_ref : (1, 4, C*H, W)    subband-major input rows (row index = c*H + i)
#   e_ref : (2, W, 2W)        column scatter: E[dx, j, 2j+dx] = 1
#   r_ref : (2, C*2H, C*H)    row scatter (block-diag over channels):
#                             R[dy, c*2H + 2i + dy, c*H + i] = 1
#   o_ref : (1, C*2H, 2W)     output rows (row index = c*2H + r)
# ----------------------------------------------------------------------------------
def haar_up_kernel(x_ref, e_ref, r_ref, o_ref):
    x = x_ref[0]                      # (4, C*H, W)
    ll, lh, hl, hh = x[0], x[1], x[2], x[3]

    # Haar synthesis phases: phase[dy][dx][r, j] = out[2i+dy, 2j+dx] for input row r=(c,i)
    a = ll + lh
    b = hl + hh
    c = ll - lh
    d = hl - hh
    p00 = a + b        # even rows, even cols
    p01 = c + d        # even rows, odd  cols
    p10 = a - b        # odd  rows, even cols
    p11 = c - d        # odd  rows, odd  cols

    e0 = e_ref[0]
    e1 = e_ref[1]
    # column interleave (j -> 2j / 2j+1) via 0/1 scatter matmul: (C*H, W) @ (W, 2W)
    row_e = (jnp.dot(p00, e0, preferred_element_type=jnp.float32)
             + jnp.dot(p01, e1, preferred_element_type=jnp.float32))   # (C*H, 2W)
    row_o = (jnp.dot(p10, e0, preferred_element_type=jnp.float32)
             + jnp.dot(p11, e1, preferred_element_type=jnp.float32))   # (C*H, 2W)

    # row interleave (i -> 2i / 2i+1 within each channel block) via 0/1 scatter matmul:
    # (C*2H, C*H) @ (C*H, 2W)
    out = (jnp.dot(r_ref[0], row_e, preferred_element_type=jnp.float32)
           + jnp.dot(r_ref[1], row_o, preferred_element_type=jnp.float32))  # (C*2H, 2W)

    o_ref[0] = out.astype(o_ref.dtype)


# ----------------------------------------------------------------------------------
# constant 0/1 scatter matrices (built once at trace time, tiny)
# ----------------------------------------------------------------------------------
def _haar_scatter_mats(c_in, h, w, dtype=jnp.float32):
    # column scatter E: (2, W, 2W), E[dx, j, 2j+dx] = 1
    jj = jnp.arange(w)
    mm = jnp.arange(2 * w)
    e0 = (mm[None, :] == 2 * jj[:, None]).astype(dtype)
    e1 = (mm[None, :] == 2 * jj[:, None] + 1).astype(dtype)
    e = jnp.stack([e0, e1], axis=0)

    # row scatter R: (2, C*2H, C*H), R[dy, c*2H + 2i + dy, c*H + i] = 1
    rows = jnp.arange(c_in * h)
    cc = rows // h
    ii = rows % h
    tgt_even = cc * (2 * h) + 2 * ii
    out_rows = jnp.arange(c_in * 2 * h)
    r0 = (out_rows[:, None] == tgt_even[None, :]).astype(dtype)
    r1 = (out_rows[:, None] == (tgt_even + 1)[None, :]).astype(dtype)
    r = jnp.stack([r0, r1], axis=0)
    return e, r


# ----------------------------------------------------------------------------------
# wrapper: only contiguous (free) host reshapes around a single pallas_call
# ----------------------------------------------------------------------------------
def haar_uping_forward(x, channel_in):
    B, c4, H, W = x.shape
    assert c4 == 4 * channel_in, (c4, channel_in)
    C = channel_in

    # (B, 4C, H, W) -> (B, 4, C, H, W) -> (B, 4, C*H, W): contiguous, no data movement.
    # Matches torch's x.reshape([B, 4, C, H, W]) channel split (subband-major).
    x4 = x.reshape(B, 4, C * H, W)

    e, r = _haar_scatter_mats(C, H, W, x.dtype)

    out2 = pl.pallas_call(
        haar_up_kernel,
        out_shape=jax.ShapeDtypeStruct((B, C * 2 * H, 2 * W), x.dtype),
        grid=(B,),
        in_specs=[
            pl.BlockSpec((1, 4, C * H, W), lambda b: (b, 0, 0, 0)),
            pl.BlockSpec((2, W, 2 * W), lambda b: (0, 0, 0)),
            pl.BlockSpec((2, C * 2 * H, C * H), lambda b: (0, 0, 0)),
        ],
        out_specs=pl.BlockSpec((1, C * 2 * H, 2 * W), lambda b: (b, 0, 0)),
        compiler_params=pltpu.CompilerParams(dimension_semantics=("parallel",)),
    )(x4, e, r)

    # (B, C*2H, 2W) -> (B, C, 2H, 2W): contiguous, free.
    return out2.reshape(B, C, 2 * H, 2 * W)


# ----------------------------------------------------------------------------------
# pure-JAX reference (mirrors torch conv_transpose2d(stride=2, groups=C) exactly)
# ----------------------------------------------------------------------------------
def haar_uping_ref(x, channel_in):
    B, c4, H, W = x.shape
    C = channel_in
    ll = x[:, 0 * C:1 * C]
    lh = x[:, 1 * C:2 * C]
    hl = x[:, 2 * C:3 * C]
    hh = x[:, 3 * C:4 * C]
    p00 = ll + lh + hl + hh
    p01 = ll - lh + hl - hh
    p10 = ll + lh - hl - hh
    p11 = ll - lh - hl + hh
    top = jnp.stack([p00, p01], axis=-1)            # (B,C,H,W,2)  dx
    bot = jnp.stack([p10, p11], axis=-1)            # (B,C,H,W,2)
    blk = jnp.stack([top, bot], axis=-2)            # (B,C,H,W,2(dy),2(dx))
    out = blk.transpose(0, 1, 2, 4, 3, 5).reshape(B, C, 2 * H, 2 * W)
    return out


if __name__ == "__main__":
    channel_in = 4
    B, H, W = 2, 16, 16

    key = jax.random.PRNGKey(0)
    x = jax.random.normal(key, (B, 4 * channel_in, H, W), jnp.float32)   # NCHW, like torch

    y = haar_uping_forward(x, channel_in)
    y = jax.block_until_ready(y)
    assert y.shape == (B, channel_in, 2 * H, 2 * W), y.shape

    ref = haar_uping_ref(x, channel_in)
    max_err = float(jnp.max(jnp.abs(y - ref)))
    assert jnp.allclose(y, ref, atol=1e-4, rtol=1e-4), max_err

    print("KERNEL_OK")
</pallas_src>

<mosaic_0001>
module attributes {stable_mosaic.version = 11 : i64} {
  func.func @haar_up_kernel(%arg0: i32, %arg1: memref<1x4x64x16xf32, #tpu.memory_space<vmem>>, %arg2: memref<2x16x32xf32, #tpu.memory_space<vmem>>, %arg3: memref<2x128x64xf32, #tpu.memory_space<vmem>>, %arg4: memref<1x128x32xf32, #tpu.memory_space<vmem>>) attributes {dimension_semantics = [#tpu.dimension_semantics<parallel>], iteration_bounds = array<i64: 2>, scalar_prefetch = 0 : i64, scratch_operands = 0 : i64, tpu.core_type = #tpu.core_type<tc>, window_params = [{transform_indices = @transform_0, window_bounds = array<i64: 1, 4, 64, 16>}, {pipeline_mode = #tpu.pipeline_mode<synchronous>, transform_indices = @transform_1, window_bounds = array<i64: 2, 16, 32>}, {pipeline_mode = #tpu.pipeline_mode<synchronous>, transform_indices = @transform_2, window_bounds = array<i64: 2, 128, 64>}, {transform_indices = @transform_3, window_bounds = array<i64: 1, 128, 32>}]} {
    %c0 = arith.constant 0 : index
    %c0_0 = arith.constant 0 : index
    %c0_1 = arith.constant 0 : index
    %c0_2 = arith.constant 0 : index
    %0 = vector.load %arg1[%c0, %c0_0, %c0_1, %c0_2] : memref<1x4x64x16xf32, #tpu.memory_space<vmem>>, vector<1x4x64x16xf32>
    %1 = vector.shape_cast %0 : vector<1x4x64x16xf32> to vector<4x64x16xf32>
    %2 = vector.extract_strided_slice %1 {offsets = [0, 0, 0], sizes = [1, 64, 16], strides = [1, 1, 1]} : vector<4x64x16xf32> to vector<1x64x16xf32>
    %3 = vector.shape_cast %2 : vector<1x64x16xf32> to vector<64x16xf32>
    %4 = vector.extract_strided_slice %1 {offsets = [1, 0, 0], sizes = [1, 64, 16], strides = [1, 1, 1]} : vector<4x64x16xf32> to vector<1x64x16xf32>
    %5 = vector.shape_cast %4 : vector<1x64x16xf32> to vector<64x16xf32>
    %6 = vector.extract_strided_slice %1 {offsets = [2, 0, 0], sizes = [1, 64, 16], strides = [1, 1, 1]} : vector<4x64x16xf32> to vector<1x64x16xf32>
    %7 = vector.shape_cast %6 : vector<1x64x16xf32> to vector<64x16xf32>
    %8 = vector.extract_strided_slice %1 {offsets = [3, 0, 0], sizes = [1, 64, 16], strides = [1, 1, 1]} : vector<4x64x16xf32> to vector<1x64x16xf32>
    %9 = vector.shape_cast %8 : vector<1x64x16xf32> to vector<64x16xf32>
    %10 = arith.addf %3, %5 : vector<64x16xf32>
    %11 = arith.addf %7, %9 : vector<64x16xf32>
    %12 = arith.subf %3, %5 : vector<64x16xf32>
    %13 = arith.subf %7, %9 : vector<64x16xf32>
    %14 = arith.addf %10, %11 : vector<64x16xf32>
    %15 = arith.addf %12, %13 : vector<64x16xf32>
    %16 = arith.subf %10, %11 : vector<64x16xf32>
    %17 = arith.subf %12, %13 : vector<64x16xf32>
    %c0_3 = arith.constant 0 : index
    %c0_4 = arith.constant 0 : index
    %c0_5 = arith.constant 0 : index
    %18 = vector.load %arg2[%c0_3, %c0_4, %c0_5] : memref<2x16x32xf32, #tpu.memory_space<vmem>>, vector<1x16x32xf32>
    %19 = vector.shape_cast %18 : vector<1x16x32xf32> to vector<16x32xf32>
    %c1 = arith.constant 1 : index
    %c0_6 = arith.constant 0 : index
    %c0_7 = arith.constant 0 : index
    %20 = vector.load %arg2[%c1, %c0_6, %c0_7] : memref<2x16x32xf32, #tpu.memory_space<vmem>>, vector<1x16x32xf32>
    %21 = vector.shape_cast %20 : vector<1x16x32xf32> to vector<16x32xf32>
    %cst = arith.constant dense<0.000000e+00> : vector<64x32xf32>
    %22 = tpu.matmul %14, %19, %cst {dimension_numbers = #tpu.dot_dimension_numbers<[1], [0], [0], [1], [0, 0, 1, 1], [], []>} : vector<64x16xf32>, vector<16x32xf32>, vector<64x32xf32> -> vector<64x32xf32>
    %cst_8 = arith.constant dense<0.000000e+00> : vector<64x32xf32>
    %23 = tpu.matmul %15, %21, %cst_8 {dimension_numbers = #tpu.dot_dimension_numbers<[1], [0], [0], [1], [0, 0, 1, 1], [], []>} : vector<64x16xf32>, vector<16x32xf32>, vector<64x32xf32> -> vector<64x32xf32>
    %24 = arith.addf %22, %23 : vector<64x32xf32>
    %cst_9 = arith.constant dense<0.000000e+00> : vector<64x32xf32>
    %25 = tpu.matmul %16, %19, %cst_9 {dimension_numbers = #tpu.dot_dimension_numbers<[1], [0], [0], [1], [0, 0, 1, 1], [], []>} : vector<64x16xf32>, vector<16x32xf32>, vector<64x32xf32> -> vector<64x32xf32>
    %cst_10 = arith.constant dense<0.000000e+00> : vector<64x32xf32>
    %26 = tpu.matmul %17, %21, %cst_10 {dimension_numbers = #tpu.dot_dimension_numbers<[1], [0], [0], [1], [0, 0, 1, 1], [], []>} : vector<64x16xf32>, vector<16x32xf32>, vector<64x32xf32> -> vector<64x32xf32>
    %27 = arith.addf %25, %26 : vector<64x32xf32>
    %c0_11 = arith.constant 0 : index
    %c0_12 = arith.constant 0 : index
    %c0_13 = arith.constant 0 : index
    %28 = vector.load %arg3[%c0_11, %c0_12, %c0_13] : memref<2x128x64xf32, #tpu.memory_space<vmem>>, vector<1x128x64xf32>
    %29 = vector.shape_cast %28 : vector<1x128x64xf32> to vector<128x64xf32>
    %cst_14 = arith.constant dense<0.000000e+00> : vector<128x32xf32>
    %30 = tpu.matmul %29, %24, %cst_14 {dimension_numbers = #tpu.dot_dimension_numbers<[1], [0], [0], [1], [0, 0, 1, 1], [], []>} : vector<128x64xf32>, vector<64x32xf32>, vector<128x32xf32> -> vector<128x32xf32>
    %c1_15 = arith.constant 1 : index
    %c0_16 = arith.constant 0 : index
    %c0_17 = arith.constant 0 : index
    %31 = vector.load %arg3[%c1_15, %c0_16, %c0_17] : memref<2x128x64xf32, #tpu.memory_space<vmem>>, vector<1x128x64xf32>
    %32 = vector.shape_cast %31 : vector<1x128x64xf32> to vector<128x64xf32>
    %cst_18 = arith.constant dense<0.000000e+00> : vector<128x32xf32>
    %33 = tpu.matmul %32, %27, %cst_18 {dimension_numbers = #tpu.dot_dimension_numbers<[1], [0], [0], [1], [0, 0, 1, 1], [], []>} : vector<128x64xf32>, vector<64x32xf32>, vector<128x32xf32> -> vector<128x32xf32>
    %34 = arith.addf %30, %33 : vector<128x32xf32>
    %c0_19 = arith.constant 0 : index
    %c0_20 = arith.constant 0 : index
    %c0_21 = arith.constant 0 : index
    %35 = vector.load %arg4[%c0_19, %c0_20, %c0_21] : memref<1x128x32xf32, #tpu.memory_space<vmem>>, vector<1x128x32xf32>
    %36 = vector.shape_cast %35 : vector<1x128x32xf32> to vector<128x32xf32>
    %37 = vector.shape_cast %34 : vector<128x32xf32> to vector<1x128x32xf32>
    tpu.vector_store %arg4[%c0_19, %c0_20, %c0_21], %37 {strides = array<i32>} : memref<1x128x32xf32, #tpu.memory_space<vmem>>, vector<1x128x32xf32>,
    return
  }
  func.func @transform_0(%arg0: i32) -> (i32, i32, i32, i32) {
    %c0_i32 = arith.constant 0 : i32
    %c0_i32_0 = arith.constant 0 : i32
    %c0_i32_1 = arith.constant 0 : i32
    %c0_i32_2 = arith.constant 0 : i32
    return %arg0, %c0_i32, %c0_i32_0, %c0_i32_1 : i32, i32, i32, i32
  }
  func.func @transform_1(%arg0: i32) -> (i32, i32, i32) {
    %c0_i32 = arith.constant 0 : i32
    %c0_i32_0 = arith.constant 0 : i32
    %c0_i32_1 = arith.constant 0 : i32
    %c0_i32_2 = arith.constant 0 : i32
    return %c0_i32, %c0_i32_0, %c0_i32_1 : i32, i32, i32
  }
  func.func @transform_2(%arg0: i32) -> (i32, i32, i32) {
    %c0_i32 = arith.constant 0 : i32
    %c0_i32_0 = arith.constant 0 : i32
    %c0_i32_1 = arith.constant 0 : i32
    %c0_i32_2 = arith.constant 0 : i32
    return %c0_i32, %c0_i32_0, %c0_i32_1 : i32, i32, i32
  }
  func.func @transform_3(%arg0: i32) -> (i32, i32, i32) {
    %c0_i32 = arith.constant 0 : i32
    %c0_i32_0 = arith.constant 0 : i32
    %c0_i32_1 = arith.constant 0 : i32
    return %arg0, %c0_i32, %c0_i32_0 : i32, i32, i32
  }
}

</mosaic_0001>

<bundles_post_ra>
// kernel: tpu_custom_call.1
= control target key start
LH: loop header
LB: loop body
LE: loop exit
PB: predicated region body
PF: predicated region fallthrough
CT: control target
= control target key end

     0   :  { %s1724_s12 = smov 0   ;;  %s2049_s0 = inlined_call_operand.vmem [shape: f32[2,4,64,16], index: 0, kind: input, shape index: {}]   ;;  %s2050_s1 = inlined_call_operand.vmem [shape: f32[2,16,32], index: 1, kind: input, shape index: {}]   ;;  %s2051_s2 = inlined_call_operand.vmem [shape: f32[2,128,64], index: 2, kind: input, shape index: {}]   ;;  %s2052_s3 = inlined_call_operand.vmem [shape: f32[2,128,32], index: 3, kind: output, shape index: {}]  }
   0x1 LB: > { %s1281_s13 = sadd.s32 4294967295, %s1702_s12   ;;  %p1285_p0 = scmp.ge.s32.totalorder %s1702_s12, 1  ;;  %s1702_s12 = sphi %s1724_s12, %s13_s12  }
   0x2   : > { %p137_p1 = scmp.lt.s32.totalorder %s1702_s12, 3 }
   0x4   : > { %p138_p2 = pnand %p1285_p0, %p137_p1 }
   0x5   : > { %v1290_v0 = vld [vmem:[%s2050_s1 + $0x10] sm:$0xff] (!%p138_p2)  ;;  %v1291_v1 = vld [vmem:[%s2050_s1 + $0x18] sm:$0xff] (!%p138_p2)  ;;  %p161_p3 = scmp.lt.s32.totalorder (!%p138_p2), %s1281_s13, 1  ;;  %v267_v2 = vld [vmem:[%s2050_s1] sm:$0xff] (!%p138_p2)  ;;  %vm272_vm0 = vcmask (!%p138_p2), 130048   ;;  %vm822_vm1 = vcmask (!%p138_p2), 523264  }
   0x6   : > { %141 = sbr.rel (%p138_p2) target bundleno = 516 (0x204), region = 32  ;;  %v1608_v3 = vpack.c.bf16 (!%p138_p2), %v1291_v1, %v1290_v0  ;;  %v268_v4 = vld [vmem:[%s2050_s1 + $0x8] sm:$0xff] (!%p138_p2)  ;;  %vm1209_vm2 = vcmask (!%p138_p2), 261120  }
   0x7   : > { %v1612_v5 = vpack.c.bf16 (!%p138_p2), %v268_v4, %v267_v2 }
   0x8   : > { %1609 = vmatprep.subr.bf16.mxu0 (!%p138_p2), %v1608_v3  ;;  %1617 = vmatprep.subr.bf16.mxu1 (!%p138_p2), %v1608_v3 }
   0x9   : > { %1611 = vmatpush3.bf16.msra.mxu0 (!%p138_p2), %v1608_v3  ;;  %1619 = vmatpush3.bf16.msra.mxu1 (!%p138_p2), %v1608_v3 }
   0xa   : > { %1613 = vmatprep.subr.bf16.mxu0 (!%p138_p2), %v1612_v5  ;;  %1621 = vmatprep.subr.bf16.mxu1 (!%p138_p2), %v1612_v5 }
   0xd   : > { %s2054_s13 = smov (!%p161_p3, %s1281_s13), 1 }
   0xe   : > { %s1374_s22 = sshll.u32 %s2054_s13, 8  ;;  %s1375_s15 = sshll.u32 %s2054_s13, 7 }
   0xf   : > { %s1750_s25 = scalar_lea.vmem %s2049_s0, %s1374_s22  ;;  %s2012_s18 = scalar_lea.vmem %s2052_s3, %s1375_s15 }
  0x10   : > { %v171_v6 = vld [vmem:[%s1750_s25] sm:$0xff]  ;;  %v1757_v11 = vld [vmem:[%s1750_s25 + $0x8] sm:$0xff]  ;;  %v1771_v17 = vld [vmem:[%s1750_s25 + $0x10] sm:$0xff] }
  0x11   : > { %v179_v7 = vld [vmem:[%s1750_s25 + $0x40] sm:$0xff]  ;;  %v1760_v12 = vld [vmem:[%s1750_s25 + $0x48] sm:$0xff]  ;;  %v1776_v19 = vld [vmem:[%s1750_s25 + $0x50] sm:$0xff] }
  0x12   : > { %v187_v8 = vld [vmem:[%s1750_s25 + $0x80] sm:$0xff]  ;;  %v219_v10 = vsub.f32 %v171_v6, %v179_v7  ;;  %v1763_v14 = vld [vmem:[%s1750_s25 + $0x88] sm:$0xff]  ;;  %v220_v16 = vsub.f32 %v1757_v11, %v1760_v12  ;;  %v1779_v20 = vld [vmem:[%s1750_s25 + $0x90] sm:$0xff]  ;;  %v221_v24 = vsub.f32 %v1771_v17, %v1776_v19  ;;  %v1797_v29 = vadd.f32 %v179_v7, %v171_v6 }
  0x13   : > { %v195_v9 = vld [vmem:[%s1750_s25 + $0xc0] sm:$0xff]  ;;  %v1766_v15 = vld [vmem:[%s1750_s25 + $0xc8] sm:$0xff]  ;;  %v1782_v21 = vld [vmem:[%s1750_s25 + $0xd0] sm:$0xff]  ;;  %v204_v6 = vadd.f32 %v1760_v12, %v1757_v11  ;;  %v205_v11 = vadd.f32 %v1776_v19, %v1771_v17 }
  0x14   : > { %v227_v13 = vsub.f32 %v187_v8, %v195_v9  ;;  %v228_v18 = vsub.f32 %v1763_v14, %v1766_v15  ;;  %v229_v25 = vsub.f32 %v1779_v20, %v1782_v21  ;;  %v1789_v26 = vld [vmem:[%s1750_s25 + $0x18] sm:$0xff]  ;;  %v1803_v33 = vld [vmem:[%s1750_s25 + $0x20] sm:$0xff]  ;;  %v1815_v40 = vld [vmem:[%s1750_s25 + $0x28] sm:$0xff]  ;;  %v211_v47 = vadd.f32 %v195_v9, %v187_v8 }
  0x15   : > { %v1792_v27 = vld [vmem:[%s1750_s25 + $0x58] sm:$0xff]  ;;  %v1806_v34 = vld [vmem:[%s1750_s25 + $0x60] sm:$0xff]  ;;  %v184_v44 = vld [vmem:[%s1750_s25 + $0x68] sm:$0xff]  ;;  %v212_v7 = vadd.f32 %v1766_v15, %v1763_v14  ;;  %v213_v12 = vadd.f32 %v1782_v21, %v1779_v20 }
  0x16   : > { %v243_v22 = vadd.f32 %v227_v13, %v219_v10  ;;  %v259_v23 = vsub.f32 %v219_v10, %v227_v13  ;;  %v1795_v28 = vld [vmem:[%s1750_s25 + $0x98] sm:$0xff]  ;;  %v244_v30 = vadd.f32 %v228_v18, %v220_v16  ;;  %v260_v31 = vsub.f32 %v220_v16, %v228_v18  ;;  %v191_v38 = vld [vmem:[%s1750_s25 + $0xa0] sm:$0xff]  ;;  %v192_v45 = vld [vmem:[%s1750_s25 + $0xa8] sm:$0xff] }
  0x17   : > { %v1800_v32 = vld [vmem:[%s1750_s25 + $0xd8] sm:$0xff]  ;;  %v245_v35 = vadd.f32 %v229_v25, %v221_v24  ;;  %v261_v36 = vsub.f32 %v221_v24, %v229_v25  ;;  %v222_v37 = vsub.f32 %v1789_v26, %v1792_v27  ;;  %v199_v39 = vld [vmem:[%s1750_s25 + $0xe0] sm:$0xff]  ;;  %v223_v42 = vsub.f32 %v1803_v33, %v1806_v34  ;;  %v200_v46 = vld [vmem:[%s1750_s25 + $0xe8] sm:$0xff] }
  0x18   : > { %1468 = vmatprep.mubr.msk.f32.mxu0 %vm272_vm0, %v243_v22  ;;  %1500 = vmatprep.mubr.msk.f32.mxu1 %vm272_vm0, %v259_v23  ;;  %v230_v41 = vsub.f32 %v1795_v28, %v1800_v32  ;;  %v231_v43 = vsub.f32 %v191_v38, %v199_v39  ;;  %v224_v48 = vsub.f32 %v1815_v40, %v184_v44  ;;  %v177_v50 = vld [vmem:[%s1750_s25 + $0x30] sm:$0xff]  ;;  %v178_v57 = vld [vmem:[%s1750_s25 + $0x38] sm:$0xff] }
  0x19   : > { %1469 = vmatmul.mubr.msk.f32.vlgmr.msra.gmra.mrb[0].mxu0 %vm272_vm0, %v244_v30  ;;  %1501 = vmatmul.mubr.msk.f32.vlgmr.msra.gmra.mrb[0].mxu1 %vm272_vm0, %v260_v31  ;;  %v232_v49 = vsub.f32 %v192_v45, %v200_v46  ;;  %v185_v51 = vld [vmem:[%s1750_s25 + $0x70] sm:$0xff]  ;;  %v186_v58 = vld [vmem:[%s1750_s25 + $0x78] sm:$0xff]  ;;  %v235_v10 = vadd.f32 %v211_v47, %v1797_v29  ;;  %v251_v13 = vsub.f32 %v1797_v29, %v211_v47 }
  0x1a   : > { %1615 = vmatpush3.bf16.msra.mxu0 %v1612_v5  ;;  %1623 = vmatpush3.bf16.msra.mxu1 %v1612_v5  ;;  %v193_v52 = vld [vmem:[%s1750_s25 + $0xb0] sm:$0xff]  ;;  %v246_v53 = vadd.f32 %v230_v41, %v222_v37  ;;  %v262_v54 = vsub.f32 %v222_v37, %v230_v41  ;;  %v247_v55 = vadd.f32 %v231_v43, %v223_v42  ;;  %v194_v63 = vld [vmem:[%s1750_s25 + $0xb8] sm:$0xff] }
  0x1b   : > { %1471 = vmatprep.mubr.msk.f32.mxu0 %vm272_vm0, %v245_v35  ;;  %1503 = vmatprep.mubr.msk.f32.mxu1 %vm272_vm0, %v261_v36  ;;  %v201_v56 = vld [vmem:[%s1750_s25 + $0xf0] sm:$0xff]  ;;  %v263_v59 = vsub.f32 %v223_v42, %v231_v43  ;;  %v248_v60 = vadd.f32 %v232_v49, %v224_v48  ;;  %v264_v61 = vsub.f32 %v224_v48, %v232_v49  ;;  %v202_v0 = vld [vmem:[%s1750_s25 + $0xf8] sm:$0xff] }
  0x1c   : > { %v225_v62 = vsub.f32 %v177_v50, %v185_v51  ;;  %v233_v1 = vsub.f32 %v193_v52, %v201_v56  ;;  %v226_v2 = vsub.f32 %v178_v57, %v186_v58  ;;  %v234_v3 = vsub.f32 %v194_v63, %v202_v0 }
  0x1d   : > { %1472 = vmatmul.mubr.msk.f32.gmra.mrb[2].mxu0 %vm272_vm0, %v246_v53  ;;  %1504 = vmatmul.mubr.msk.f32.gmra.mrb[2].mxu1 %vm272_vm0, %v262_v54  ;;  %v236_v14 = vadd.f32 %v212_v7, %v204_v6  ;;  %v252_v15 = vsub.f32 %v204_v6, %v212_v7  ;;  %v206_v16 = vadd.f32 %v1792_v27, %v1789_v26  ;;  %v1328_v6 = vld [vmem:[%s2051_s2 + $0xa0] sm:$0xff] }
  0x1e   : > { %1474 = vmatprep.mubr.msk.f32.mxu0 %vm272_vm0, %v247_v55  ;;  %1506 = vmatprep.mubr.msk.f32.mxu1 %vm272_vm0, %v263_v59  ;;  %v249_v4 = vadd.f32 %v233_v1, %v225_v62  ;;  %v265_v5 = vsub.f32 %v225_v62, %v233_v1  ;;  %v250_v8 = vadd.f32 %v234_v3, %v226_v2  ;;  %v790_v1 = vld [vmem:[%s2051_s2 + $0x8] sm:$0xff]  ;;  %v793_v7 = vld [vmem:[%s2051_s2 + $0x20] sm:$0xff] }
  0x1f   : > { %v266_v9 = vsub.f32 %v226_v2, %v234_v3  ;;  %v214_v18 = vadd.f32 %v1800_v32, %v1795_v28  ;;  %v207_v22 = vadd.f32 %v1806_v34, %v1803_v33  ;;  %v215_v23 = vadd.f32 %v199_v39, %v191_v38  ;;  %v1324_v38 = vld [vmem:[%s2051_s2 + $0x80] sm:$0xff]  ;;  %v1326_v2 = vld [vmem:[%s2051_s2 + $0x90] sm:$0xff] }
  0x20   : > { %v237_v17 = vadd.f32 %v213_v12, %v205_v11  ;;  %v253_v19 = vsub.f32 %v205_v11, %v213_v12  ;;  %v208_v20 = vadd.f32 %v184_v44, %v1815_v40  ;;  %v216_v21 = vadd.f32 %v200_v46, %v192_v45  ;;  %v789_v39 = vld [vmem:[%s2051_s2] sm:$0xff]  ;;  %v791_v3 = vld [vmem:[%s2051_s2 + $0x10] sm:$0xff]  ;;  %v1331_v11 = vld [vmem:[%s2051_s2 + $0xb8] sm:$0xff] }
  0x21   : > { %1475 = vmatmul.mubr.msk.f32.gmra.mrb[4].mxu0 %vm272_vm0, %v248_v60  ;;  %1507 = vmatmul.mubr.msk.f32.gmra.mrb[4].mxu1 %vm272_vm0, %v264_v61  ;;  %v238_v24 = vadd.f32 %v214_v18, %v206_v16  ;;  %v254_v25 = vsub.f32 %v206_v16, %v214_v18  ;;  %v239_v26 = vadd.f32 %v215_v23, %v207_v22  ;;  %v796_v12 = vld [vmem:[%s2051_s2 + $0x38] sm:$0xff]  ;;  %v1333_v16 = vld [vmem:[%s2051_s2 + $0xc8] sm:$0xff] }
  0x22   : > { %1477 = vmatprep.mubr.msk.f32.mxu0 %vm272_vm0, %v249_v4  ;;  %1509 = vmatprep.mubr.msk.f32.mxu1 %vm272_vm0, %v265_v5  ;;  %v255_v27 = vsub.f32 %v207_v22, %v215_v23  ;;  %v209_v28 = vadd.f32 %v185_v51, %v177_v50  ;;  %v217_v29 = vadd.f32 %v201_v56, %v193_v52  ;;  %v1327_v4 = vld [vmem:[%s2051_s2 + $0x98] sm:$0xff]  ;;  %v798_v18 = vld [vmem:[%s2051_s2 + $0x48] sm:$0xff]  ;;  %v1334_v22 = vld [vmem:[%s2051_s2 + $0xd0] sm:$0xff] }
  0x23   : > { %v240_v30 = vadd.f32 %v216_v21, %v208_v20  ;;  %v256_v31 = vsub.f32 %v208_v20, %v216_v21  ;;  %v210_v32 = vadd.f32 %v186_v58, %v178_v57  ;;  %v218_v33 = vadd.f32 %v202_v0, %v194_v63  ;;  %v1325_v0 = vld [vmem:[%s2051_s2 + $0x88] sm:$0xff]  ;;  %v792_v5 = vld [vmem:[%s2051_s2 + $0x18] sm:$0xff]  ;;  %v799_v23 = vld [vmem:[%s2051_s2 + $0x50] sm:$0xff] }
  0x24   : > { %v241_v34 = vadd.f32 %v217_v29, %v209_v28  ;;  %v257_v35 = vsub.f32 %v209_v28, %v217_v29  ;;  %v1336_v20 = vld [vmem:[%s2051_s2 + $0xe0] sm:$0xff]  ;;  %v1339_v28 = vld [vmem:[%s2051_s2 + $0xf8] sm:$0xff] }
  0x25   : > { %1478 = vmatmul.mubr.msk.f32.gmra.mrb[6].mxu0 %vm272_vm0, %v250_v8  ;;  %1510 = vmatmul.mubr.msk.f32.gmra.mrb[6].mxu1 %vm272_vm0, %v266_v9  ;;  %v242_v36 = vadd.f32 %v218_v33, %v210_v32  ;;  %v258_v37 = vsub.f32 %v210_v32, %v218_v33  ;;  %v1329_v8 = vld [vmem:[%s2051_s2 + $0xa8] sm:$0xff]  ;;  %v801_v21 = vld [vmem:[%s2051_s2 + $0x60] sm:$0xff]  ;;  %v804_v29 = vld [vmem:[%s2051_s2 + $0x78] sm:$0xff] }
  0x26   : > { %1484 = vmatprep.mubr.msk.f32.mxu0 %vm272_vm0, %v235_v10  ;;  %1516 = vmatprep.mubr.msk.f32.mxu1 %vm272_vm0, %v251_v13  ;;  %v794_v9 = vld [vmem:[%s2051_s2 + $0x28] sm:$0xff]  ;;  %v1330_v10 = vld [vmem:[%s2051_s2 + $0xb0] sm:$0xff] }
  0x27   : > { %v795_v13 = vld [vmem:[%s2051_s2 + $0x30] sm:$0xff] }
  0x29   : > { %1485 = vmatmul.mubr.msk.f32.vlgmr.msra.gmra.mrb[0].mxu0 %vm272_vm0, %v236_v14  ;;  %1517 = vmatmul.mubr.msk.f32.vlgmr.msra.gmra.mrb[0].mxu1 %vm272_vm0, %v252_v15  ;;  %v1332_v14 = vld [vmem:[%s2051_s2 + $0xc0] sm:$0xff] }
  0x2a   : > { %1487 = vmatprep.mubr.msk.f32.mxu0 %vm272_vm0, %v237_v17  ;;  %1519 = vmatprep.mubr.msk.f32.mxu1 %vm272_vm0, %v253_v19  ;;  %v797_v15 = vld [vmem:[%s2051_s2 + $0x40] sm:$0xff]  ;;  %v1335_v17 = vld [vmem:[%s2051_s2 + $0xd8] sm:$0xff] }
  0x2b   : > { %v800_v19 = vld [vmem:[%s2051_s2 + $0x58] sm:$0xff] }
  0x2d   : > { %1488 = vmatmul.mubr.msk.f32.gmra.mrb[2].mxu0 %vm272_vm0, %v238_v24  ;;  %1520 = vmatmul.mubr.msk.f32.gmra.mrb[2].mxu1 %vm272_vm0, %v254_v25  ;;  %v1337_v24 = vld [vmem:[%s2051_s2 + $0xe8] sm:$0xff] }
  0x2e   : > { %1490 = vmatprep.mubr.msk.f32.mxu0 %vm272_vm0, %v239_v26  ;;  %1522 = vmatprep.mubr.msk.f32.mxu1 %vm272_vm0, %v255_v27  ;;  %v802_v25 = vld [vmem:[%s2051_s2 + $0x68] sm:$0xff]  ;;  %v1338_v26 = vld [vmem:[%s2051_s2 + $0xf0] sm:$0xff] }
  0x2f   : > { %v803_v27 = vld [vmem:[%s2051_s2 + $0x70] sm:$0xff] }
  0x31   : > { %1491 = vmatmul.mubr.msk.f32.gmra.mrb[4].mxu0 %vm272_vm0, %v240_v30  ;;  %1523 = vmatmul.mubr.msk.f32.gmra.mrb[4].mxu1 %vm272_vm0, %v256_v31 }
  0x32   : > { %1493 = vmatprep.mubr.msk.f32.mxu0 %vm272_vm0, %v241_v34  ;;  %1525 = vmatprep.mubr.msk.f32.mxu1 %vm272_vm0, %v257_v35 }
  0x35   : > { %1494 = vmatmul.mubr.msk.f32.gmra.mrb[6].mxu0 %vm272_vm0, %v242_v36  ;;  %1526 = vmatmul.mubr.msk.f32.gmra.mrb[6].mxu1 %vm272_vm0, %v258_v37 }
  0x36   : > { %1544 = vmatprep.mubr.msk.f32.mxu1 %vm822_vm1, %v1324_v38  ;;  %1584 = vmatprep.mubr.msk.f32.mxu0 %vm822_vm1, %v789_v39 }
  0xfc   : > { %v1486_v40 = vpop.f32.mrb[0].mxu0  ;;  %v1518_v41 = vpop.f32.mrb[0].mxu1 }
  0xfd   : > { %v492_v42 = vpop.f32.mrb[1].mxu0  ;;  %v750_v43 = vpop.f32.mrb[1].mxu1 }
  0xfe   : > { %v1640_v44 = vpack.c.bf16 %v1486_v40, %v492_v42  ;;  %v1624_v45 = vpack.c.bf16 %v1518_v41, %v750_v43 }
 0x100   : > { %v1489_v46 = vpop.f32.mrb[2].mxu0  ;;  %v1521_v47 = vpop.f32.mrb[2].mxu1  ;;  %1625 = vmatprep.subr.bf16.mxu1 %v1624_v45  ;;  %1641 = vmatprep.subr.bf16.mxu0 %v1640_v44 }
 0x101   : > { %v502_v48 = vpop.f32.mrb[3].mxu0  ;;  %v760_v49 = vpop.f32.mrb[3].mxu1  ;;  %1627 = vmatpush3.bf16.msra.mxu1 %v1624_v45  ;;  %1643 = vmatpush3.bf16.msra.mxu0 %v1640_v44 }
 0x102   : > { %v1644_v50 = vpack.c.bf16 %v1489_v46, %v502_v48  ;;  %v1628_v51 = vpack.c.bf16 %v1521_v47, %v760_v49 }
 0x104   : > { %v1492_v52 = vpop.f32.mrb[4].mxu0  ;;  %v1524_v53 = vpop.f32.mrb[4].mxu1  ;;  %1629 = vmatprep.subr.bf16.mxu1 %v1628_v51  ;;  %1645 = vmatprep.subr.bf16.mxu0 %v1644_v50 }
 0x105   : > { %v512_v54 = vpop.f32.mrb[5].mxu0  ;;  %v770_v55 = vpop.f32.mrb[5].mxu1  ;;  %1631 = vmatpush3.bf16.msra.mxu1 %v1628_v51  ;;  %1647 = vmatpush3.bf16.msra.mxu0 %v1644_v50 }
 0x106   : > { %v1648_v56 = vpack.c.bf16 %v1492_v52, %v512_v54  ;;  %v1632_v57 = vpack.c.bf16 %v1524_v53, %v770_v55 }
 0x108   : > { %v1495_v58 = vpop.f32.mrb[6].mxu0  ;;  %v1527_v59 = vpop.f32.mrb[6].mxu1  ;;  %1633 = vmatprep.subr.bf16.mxu1 %v1632_v57  ;;  %1649 = vmatprep.subr.bf16.mxu0 %v1648_v56 }
 0x109   : > { %v522_v60 = vpop.f32.mrb[7].mxu0  ;;  %v780_v61 = vpop.f32.mrb[7].mxu1  ;;  %1635 = vmatpush3.bf16.msra.mxu1 %v1632_v57  ;;  %1651 = vmatpush3.bf16.msra.mxu0 %v1648_v56 }
 0x10a   : > { %v1652_v62 = vpack.c.bf16 %v1495_v58, %v522_v60  ;;  %v1636_v63 = vpack.c.bf16 %v1527_v59, %v780_v61 }
 0x10c   : > { %1637 = vmatprep.subr.bf16.mxu1 %v1636_v63  ;;  %1653 = vmatprep.subr.bf16.mxu0 %v1652_v62 }
 0x10d   : > { %1639 = vmatpush3.bf16.msra.mxu1 %v1636_v63  ;;  %1655 = vmatpush3.bf16.msra.mxu0 %v1652_v62 }
 0x110   : > { %1545 = vmatmul.mubr.msk.f32.vlgmr.msra.gmra.mrb[8].mxu1 %vm822_vm1, %v1325_v0  ;;  %1585 = vmatmul.mubr.msk.f32.vlgmr.msra.gmra.mrb[8].mxu0 %vm822_vm1, %v790_v1 }
 0x111   : > { %1547 = vmatprep.mubr.msk.f32.mxu1 %vm822_vm1, %v1326_v2  ;;  %1587 = vmatprep.mubr.msk.f32.mxu0 %vm822_vm1, %v791_v3 }
 0x114   : > { %1548 = vmatmul.mubr.msk.f32.gmra.mrb[10].mxu1 %vm822_vm1, %v1327_v4  ;;  %1588 = vmatmul.mubr.msk.f32.gmra.mrb[10].mxu0 %vm822_vm1, %v792_v5 }
 0x115   : > { %1550 = vmatprep.mubr.msk.f32.mxu1 %vm822_vm1, %v1328_v6  ;;  %1590 = vmatprep.mubr.msk.f32.mxu0 %vm822_vm1, %v793_v7 }
 0x118   : > { %1551 = vmatmul.mubr.msk.f32.gmra.mrb[12].mxu1 %vm822_vm1, %v1329_v8  ;;  %1591 = vmatmul.mubr.msk.f32.gmra.mrb[12].mxu0 %vm822_vm1, %v794_v9 }
 0x119   : > { %1553 = vmatprep.mubr.msk.f32.mxu1 %vm822_vm1, %v1330_v10  ;;  %1593 = vmatprep.mubr.msk.f32.mxu0 %vm822_vm1, %v795_v13 }
 0x11c   : > { %1554 = vmatmul.mubr.msk.f32.gmra.mrb[14].mxu1 %vm822_vm1, %v1331_v11  ;;  %1594 = vmatmul.mubr.msk.f32.gmra.mrb[14].mxu0 %vm822_vm1, %v796_v12 }
 0x11d   : > { %1556 = vmatprep.mubr.msk.f32.mxu1 %vm822_vm1, %v1332_v14  ;;  %1596 = vmatprep.mubr.msk.f32.mxu0 %vm822_vm1, %v797_v15 }
 0x120   : > { %1557 = vmatmul.mubr.msk.f32.gmra.mrb[16].mxu1 %vm822_vm1, %v1333_v16  ;;  %1597 = vmatmul.mubr.msk.f32.gmra.mrb[16].mxu0 %vm822_vm1, %v798_v18 }
 0x121   : > { %1559 = vmatprep.mubr.msk.f32.mxu1 %vm822_vm1, %v1334_v22  ;;  %1599 = vmatprep.mubr.msk.f32.mxu0 %vm822_vm1, %v799_v23 }
 0x124   : > { %1560 = vmatmul.mubr.msk.f32.gmra.mrb[18].mxu1 %vm822_vm1, %v1335_v17  ;;  %1600 = vmatmul.mubr.msk.f32.gmra.mrb[18].mxu0 %vm822_vm1, %v800_v19 }
 0x125   : > { %1562 = vmatprep.mubr.msk.f32.mxu1 %vm822_vm1, %v1336_v20  ;;  %1602 = vmatprep.mubr.msk.f32.mxu0 %vm822_vm1, %v801_v21 }
 0x128   : > { %1563 = vmatmul.mubr.msk.f32.gmra.mrb[20].mxu1 %vm822_vm1, %v1337_v24  ;;  %1603 = vmatmul.mubr.msk.f32.gmra.mrb[20].mxu0 %vm822_vm1, %v802_v25 }
 0x129   : > { %1565 = vmatprep.mubr.msk.f32.mxu1 %vm822_vm1, %v1338_v26  ;;  %1605 = vmatprep.mubr.msk.f32.mxu0 %vm822_vm1, %v803_v27 }
 0x12c   : > { %1566 = vmatmul.mubr.msk.f32.gmra.mrb[22].mxu1 %vm822_vm1, %v1339_v28  ;;  %1606 = vmatmul.mubr.msk.f32.gmra.mrb[22].mxu0 %vm822_vm1, %v804_v29 }
 0x1e3   : > { %v1546_v30 = vpop.f32.mrb[8].mxu1  ;;  %v1586_v31 = vpop.f32.mrb[8].mxu0 }
 0x1e4   : > { %v1136_v32 = vadd.f32 %v1586_v31, %v1546_v30  ;;  %v937_v33 = vpop.f32.mrb[9].mxu1  ;;  %v1130_v34 = vpop.f32.mrb[9].mxu0 }
 0x1e5   : > { %v1131_v35 = vadd.f32 %v1130_v34, %v937_v33 }
 0x1e6   : > { %1211 = vst.msk [vmem:[%s2012_s18 + $0x8] sm:$0xff] %vm1209_vm2, %v1136_v32 }
 0x1e7   : > { %1210 = vst.msk [vmem:[%s2012_s18] sm:$0xff] %vm1209_vm2, %v1131_v35  ;;  %v1549_v36 = vpop.f32.mrb[10].mxu1  ;;  %v1589_v37 = vpop.f32.mrb[10].mxu0 }
 0x1e8   : > { %v1146_v38 = vadd.f32 %v1589_v37, %v1549_v36  ;;  %v947_v39 = vpop.f32.mrb[11].mxu1  ;;  %v1140_v40 = vpop.f32.mrb[11].mxu0 }
 0x1e9   : > { %v1141_v41 = vadd.f32 %v1140_v40, %v947_v39 }
 0x1ea   : > { %1213 = vst.msk [vmem:[%s2012_s18 + $0x18] sm:$0xff] %vm1209_vm2, %v1146_v38 }
 0x1eb   : > { %1212 = vst.msk [vmem:[%s2012_s18 + $0x10] sm:$0xff] %vm1209_vm2, %v1141_v41  ;;  %v1552_v42 = vpop.f32.mrb[12].mxu1  ;;  %v1592_v43 = vpop.f32.mrb[12].mxu0 }
 0x1ec   : > { %v1156_v44 = vadd.f32 %v1592_v43, %v1552_v42  ;;  %v957_v45 = vpop.f32.mrb[13].mxu1  ;;  %v1150_v46 = vpop.f32.mrb[13].mxu0 }
 0x1ed   : > { %v1151_v47 = vadd.f32 %v1150_v46, %v957_v45 }
 0x1ee   : > { %1215 = vst.msk [vmem:[%s2012_s18 + $0x28] sm:$0xff] %vm1209_vm2, %v1156_v44 }
 0x1ef   : > { %1214 = vst.msk [vmem:[%s2012_s18 + $0x20] sm:$0xff] %vm1209_vm2, %v1151_v47  ;;  %v1555_v48 = vpop.f32.mrb[14].mxu1  ;;  %v1595_v49 = vpop.f32.mrb[14].mxu0 }
 0x1f0   : > { %v1166_v50 = vadd.f32 %v1595_v49, %v1555_v48  ;;  %v967_v51 = vpop.f32.mrb[15].mxu1  ;;  %v1160_v52 = vpop.f32.mrb[15].mxu0 }
 0x1f1   : > { %v1161_v53 = vadd.f32 %v1160_v52, %v967_v51 }
 0x1f2   : > { %1217 = vst.msk [vmem:[%s2012_s18 + $0x38] sm:$0xff] %vm1209_vm2, %v1166_v50 }
 0x1f3   : > { %1216 = vst.msk [vmem:[%s2012_s18 + $0x30] sm:$0xff] %vm1209_vm2, %v1161_v53  ;;  %v1558_v54 = vpop.f32.mrb[16].mxu1  ;;  %v1598_v55 = vpop.f32.mrb[16].mxu0 }
 0x1f4   : > { %v1176_v56 = vadd.f32 %v1598_v55, %v1558_v54  ;;  %v977_v57 = vpop.f32.mrb[17].mxu1  ;;  %v1170_v58 = vpop.f32.mrb[17].mxu0 }
 0x1f5   : > { %v1171_v59 = vadd.f32 %v1170_v58, %v977_v57 }
 0x1f6   : > { %1219 = vst.msk [vmem:[%s2012_s18 + $0x48] sm:$0xff] %vm1209_vm2, %v1176_v56 }
 0x1f7   : > { %1218 = vst.msk [vmem:[%s2012_s18 + $0x40] sm:$0xff] %vm1209_vm2, %v1171_v59  ;;  %v1561_v60 = vpop.f32.mrb[18].mxu1  ;;  %v1601_v61 = vpop.f32.mrb[18].mxu0 }
 0x1f8   : > { %v1186_v62 = vadd.f32 %v1601_v61, %v1561_v60  ;;  %v987_v63 = vpop.f32.mrb[19].mxu1  ;;  %v1180_v0 = vpop.f32.mrb[19].mxu0 }
 0x1f9   : > { %v1181_v1 = vadd.f32 %v1180_v0, %v987_v63 }
 0x1fa   : > { %1221 = vst.msk [vmem:[%s2012_s18 + $0x58] sm:$0xff] %vm1209_vm2, %v1186_v62 }
 0x1fb   : > { %1220 = vst.msk [vmem:[%s2012_s18 + $0x50] sm:$0xff] %vm1209_vm2, %v1181_v1  ;;  %v1564_v2 = vpop.f32.mrb[20].mxu1  ;;  %v1604_v3 = vpop.f32.mrb[20].mxu0 }
 0x1fc   : > { %v1196_v4 = vadd.f32 %v1604_v3, %v1564_v2  ;;  %v997_v5 = vpop.f32.mrb[21].mxu1  ;;  %v1190_v6 = vpop.f32.mrb[21].mxu0 }
 0x1fd   : > { %v1191_v7 = vadd.f32 %v1190_v6, %v997_v5 }
 0x1fe   : > { %1223 = vst.msk [vmem:[%s2012_s18 + $0x68] sm:$0xff] %vm1209_vm2, %v1196_v4 }
 0x1ff   : > { %1222 = vst.msk [vmem:[%s2012_s18 + $0x60] sm:$0xff] %vm1209_vm2, %v1191_v7  ;;  %v1567_v8 = vpop.f32.mrb[22].mxu1  ;;  %v1607_v9 = vpop.f32.mrb[22].mxu0 }
 0x200   : > { %v1206_v10 = vadd.f32 %v1607_v9, %v1567_v8  ;;  %v1007_v13 = vpop.f32.mrb[23].mxu1  ;;  %v1200_v11 = vpop.f32.mrb[23].mxu0 }
 0x201   : > { %v1201_v12 = vadd.f32 %v1200_v11, %v1007_v13 }
 0x202   : > { %1225 = vst.msk [vmem:[%s2012_s18 + $0x78] sm:$0xff] %vm1209_vm2, %v1206_v10 }
 0x203   : > { %1224 = vst.msk [vmem:[%s2012_s18 + $0x70] sm:$0xff] %vm1209_vm2, %v1201_v12 }
 0x204 PF: > { %s13_s12 = sadd.s32 1, %s1702_s12  }
 0x205   : > { %p10_p4 = scmp.ge.s32.totalorder %s13_s12, 4  }
 0x207   :  { %12 = sbr.rel (!%p10_p4) target bundleno = 1 (0x1), region = 64 }

</bundles_post_ra>
